<compile_context>
chip_gen: v7x
topology: tpu7x:2x2x1
jax: 0.10.0
libtpu: 0.0.40
codegen_flags: <defaults>
</compile_context>

<pallas_src>
import jax
import jax.numpy as jnp
from jax.experimental import pallas as pl
from jax.experimental.pallas import tpu as pltpu

LN_EPS = 1e-5  # torch.nn.LayerNorm default eps


def _rating_predictor_kernel(ut_ref, it_ref, wt_ref, p_ref, k2_ref, rep_ref,
                             sel_ref, out_ref):
    """Fused Linear -> (identity act) -> LayerNorm -> per-class bilinear form.

    Feature-major layout: every operand carries the sample index in the lane
    (minor) dimension, so all elementwise math, both LayerNorm reductions
    (over the feature/sublane axis), all matmul results and the final store
    are lane-dense.
    """
    d = wt_ref.shape[0]
    inv_d = 1.0 / d

    p = p_ref[...]                      # (D, 3) f32 : [ b | gamma | beta ]
    b_col = p[:, 0:1]                   # (D, 1)
    g_col = p[:, 1:2]
    be_col = p[:, 2:3]

    def project_ln(x_ref):
        # (D, F) @ (F, TN) -> (D, TN); bf16 operands, f32 accumulation (MXU).
        h = jnp.dot(wt_ref[...], x_ref[...],
                    preferred_element_type=jnp.float32) + b_col
        # One-pass LayerNorm stats over the feature (sublane) axis.
        mu = jnp.sum(h, axis=0, keepdims=True) * inv_d          # (1, TN)
        ms = jnp.sum(h * h, axis=0, keepdims=True) * inv_d      # (1, TN)
        scale = jax.lax.rsqrt(ms - mu * mu + LN_EPS)            # (1, TN)
        return ((h - mu) * scale * g_col + be_col).astype(jnp.bfloat16)

    u_ln = project_ln(ut_ref)           # (D, TN) bf16
    i_ln = project_ln(it_ref)           # (D, TN) bf16

    # tmp[c*D + d, n] = sum_e kern[c, e, d] * i_ln[n, e]      (class matmuls)
    tmp = jnp.dot(k2_ref[...], i_ln, preferred_element_type=jnp.float32)
    # u_rep[c*D + d, n] = u_ln[n, d]   (per-class replication done on the MXU)
    u_rep = jnp.dot(rep_ref[...], u_ln, preferred_element_type=jnp.float32)

    prod = (tmp * u_rep).astype(jnp.bfloat16)                   # (C*D, TN)

    # out[c, n] = sum_d prod[c*D + d, n] : 0/1 segmented reduce, bf16 MXU.
    out_ref[...] = jnp.dot(sel_ref[...], prod,
                           preferred_element_type=jnp.float32)  # (C, TN)


def rating_predictor(u, i, W, b, gamma, beta, coeffs, bases, *,
                     tile_n=None, compute_dtype=jnp.bfloat16,
                     vmem_limit_bytes=None):
    """u, i: (N, in_feats).  W: (in_feats, out_feats) (transposed nn.Linear
    weight).  Returns (N, n_classes) float32 — same as the PyTorch forward."""
    N, F = u.shape
    D = W.shape[1]
    C = bases.shape[1]
    CD = C * D

    if tile_n is None:
        # ~1.5-2 KB/row of lane-dense f32 intermediates per grid step:
        # 4096 rows ≈ 6-8 MiB, inside v5e's 16 MiB default scoped VMEM and far
        # below v7x's 64 MiB physical VMEM, while amortizing the ~0.35 us
        # fixed per-grid-step overhead.
        tile_n = min(N, 4096)
        while tile_n > 128 and N % tile_n != 0:
            tile_n //= 2
        # Keep >=2 grid steps where possible so the "parallel" axis can shard
        # across v7x's two TensorCores.
        if N // tile_n < 2 and tile_n % 256 == 0:
            tile_n //= 2
    assert N % tile_n == 0, (N, tile_n)
    # tile_n is the lane dimension of every block -> multiple of 128 (or full N).
    assert tile_n == N or tile_n % 128 == 0, tile_n

    # ---- constants / layout plumbing (all XLA-side, outside the kernel) ----
    kern = jnp.sum(coeffs * bases, axis=0)                       # (C, D, D) f32
    # k2[c*D + d, e] = kern[c, e, d]      -> tmp = k2 @ i_ln^T
    k2 = jnp.transpose(kern, (0, 2, 1)).reshape(CD, D)
    # rep[c*D + d, d'] = (d == d')        -> u replicated per class via the MXU
    rep = jnp.tile(jnp.eye(D, dtype=jnp.float32), (C, 1))        # (CD, D)
    # sel[c, k] = (k // D == c)           -> segmented reduction over D
    sel = (jnp.arange(C)[:, None]
           == (jnp.arange(CD)[None, :] // D)).astype(jnp.float32)  # (C, CD)

    params = jnp.stack([b, gamma, beta], axis=1).astype(jnp.float32)  # (D, 3)

    wt = W.T.astype(compute_dtype)                               # (D, F)
    k2 = k2.astype(compute_dtype)
    rep = rep.astype(compute_dtype)                              # exact 0/1
    sel = sel.astype(compute_dtype)                              # exact 0/1

    # Feature-major operands: one fused transpose+cast pass each in XLA.
    ut = u.T.astype(compute_dtype)                               # (F, N)
    it = i.T.astype(compute_dtype)                               # (F, N)

    out_t = pl.pallas_call(
        _rating_predictor_kernel,
        out_shape=jax.ShapeDtypeStruct((C, N), jnp.float32),
        grid=(N // tile_n,),
        in_specs=[
            pl.BlockSpec((F, tile_n), lambda r: (0, r)),   # u^T column tile
            pl.BlockSpec((F, tile_n), lambda r: (0, r)),   # i^T column tile
            pl.BlockSpec((D, F), lambda r: (0, 0)),        # W^T
            pl.BlockSpec((D, 3), lambda r: (0, 0)),        # [b | gamma | beta]
            pl.BlockSpec((CD, D), lambda r: (0, 0)),       # stacked class kernels
            pl.BlockSpec((CD, D), lambda r: (0, 0)),       # replication matrix
            pl.BlockSpec((C, CD), lambda r: (0, 0)),       # segmented-reduce matrix
        ],
        out_specs=pl.BlockSpec((C, tile_n), lambda r: (0, r)),
        compiler_params=pltpu.CompilerParams(
            dimension_semantics=("parallel",),
            vmem_limit_bytes=vmem_limit_bytes),
    )(ut, it, wt, params, k2, rep, sel)

    # PyTorch forward ends with `.t()`; mirror it here (tiny XLA transpose).
    return out_t.T                                               # (N, C)


if __name__ == "__main__":
    key = jax.random.PRNGKey(0)
    N, in_feats, out_feats = 256, 16, 32
    n_bases, n_classes = 3, 4

    ks = jax.random.split(key, 8)
    u = jax.random.normal(ks[0], (N, in_feats), jnp.float32)
    i = jax.random.normal(ks[1], (N, in_feats), jnp.float32)

    # Deterministic synthetic parameter init (shapes as in __init__).
    bound = 1.0 / (in_feats ** 0.5)
    W = jax.random.uniform(ks[2], (in_feats, out_feats), jnp.float32,
                           -bound, bound)                  # Linear weight (transposed)
    b = jax.random.uniform(ks[3], (out_feats,), jnp.float32, -bound, bound)
    # Non-trivial LayerNorm affine params so the gamma/beta paths are exercised.
    gamma = 1.0 + 0.1 * jax.random.normal(ks[6], (out_feats,), jnp.float32)
    beta = 0.05 * jax.random.normal(ks[7], (out_feats,), jnp.float32)
    coeffs = 0.1 * jax.random.normal(ks[4], (n_bases, n_classes, 1, 1),
                                     jnp.float32)
    bases = 0.1 * jax.random.normal(
        ks[5], (n_bases, n_classes, out_feats, out_feats), jnp.float32)

    # Default tile heuristic picks tile_n=128 here -> a 2-step "parallel" grid.
    out = rating_predictor(u, i, W, b, gamma, beta, coeffs, bases)
    out = jax.block_until_ready(out)

    # Pure-JAX reference reproducing the PyTorch forward semantics, evaluated
    # on the same bf16-rounded matmul operands (f32 math) that the kernel sees.
    def bf16_round(x):
        return x.astype(jnp.bfloat16).astype(jnp.float32)

    def reference(u_, i_, W_, b_, gamma_, beta_, kern_):
        def lin_ln(x):
            h = x @ W_ + b_
            mu = h.mean(-1, keepdims=True)
            var = ((h - mu) ** 2).mean(-1, keepdims=True)
            return (h - mu) / jnp.sqrt(var + LN_EPS) * gamma_ + beta_
        u_ln = bf16_round(lin_ln(u_))          # kernel casts LN outputs to bf16
        i_ln = bf16_round(lin_ln(i_))
        bm = jnp.einsum('ne,ced->cnd', i_ln, kern_)            # th.bmm
        return jnp.sum(u_ln[None] * bm, axis=2).T              # (N, C)

    kern_full = jnp.sum(coeffs * bases, axis=0)
    expected = reference(bf16_round(u), bf16_round(i), bf16_round(W),
                         b, gamma, beta, bf16_round(kern_full))

    assert out.shape == (N, n_classes), out.shape
    err = float(jnp.max(jnp.abs(out - expected)))
    assert jnp.allclose(out, expected, atol=2e-2, rtol=2e-2), err
    print("KERNEL_OK")
</pallas_src>

<mosaic_0001>
module attributes {stable_mosaic.version = 11 : i64} {
  func.func @_rating_predictor_kernel(%arg0: i32, %arg1: memref<16x128xbf16, #tpu.memory_space<vmem>>, %arg2: memref<16x128xbf16, #tpu.memory_space<vmem>>, %arg3: memref<32x16xbf16, #tpu.memory_space<vmem>>, %arg4: memref<32x3xf32, #tpu.memory_space<vmem>>, %arg5: memref<128x32xbf16, #tpu.memory_space<vmem>>, %arg6: memref<128x32xbf16, #tpu.memory_space<vmem>>, %arg7: memref<4x128xbf16, #tpu.memory_space<vmem>>, %arg8: memref<4x128xf32, #tpu.memory_space<vmem>>) attributes {dimension_semantics = [#tpu.dimension_semantics<parallel>], iteration_bounds = array<i64: 2>, scalar_prefetch = 0 : i64, scratch_operands = 0 : i64, tpu.core_type = #tpu.core_type<tc>, window_params = [{transform_indices = @transform_0, window_bounds = array<i64: 16, 128>}, {transform_indices = @transform_1, window_bounds = array<i64: 16, 128>}, {pipeline_mode = #tpu.pipeline_mode<synchronous>, transform_indices = @transform_2, window_bounds = array<i64: 32, 16>}, {pipeline_mode = #tpu.pipeline_mode<synchronous>, transform_indices = @transform_3, window_bounds = array<i64: 32, 3>}, {pipeline_mode = #tpu.pipeline_mode<synchronous>, transform_indices = @transform_4, window_bounds = array<i64: 128, 32>}, {pipeline_mode = #tpu.pipeline_mode<synchronous>, transform_indices = @transform_5, window_bounds = array<i64: 128, 32>}, {pipeline_mode = #tpu.pipeline_mode<synchronous>, transform_indices = @transform_6, window_bounds = array<i64: 4, 128>}, {transform_indices = @transform_7, window_bounds = array<i64: 4, 128>}]} {
    %c0 = arith.constant 0 : index
    %c0_0 = arith.constant 0 : index
    %0 = vector.load %arg4[%c0, %c0_0] : memref<32x3xf32, #tpu.memory_space<vmem>>, vector<32x3xf32>
    %1 = vector.extract_strided_slice %0 {offsets = [0, 0], sizes = [32, 1], strides = [1, 1]} : vector<32x3xf32> to vector<32x1xf32>
    %2 = vector.extract_strided_slice %0 {offsets = [0, 1], sizes = [32, 1], strides = [1, 1]} : vector<32x3xf32> to vector<32x1xf32>
    %3 = vector.extract_strided_slice %0 {offsets = [0, 2], sizes = [32, 1], strides = [1, 1]} : vector<32x3xf32> to vector<32x1xf32>
    %c0_1 = arith.constant 0 : index
    %c0_2 = arith.constant 0 : index
    %4 = vector.load %arg3[%c0_1, %c0_2] : memref<32x16xbf16, #tpu.memory_space<vmem>>, vector<32x16xbf16>
    %c0_3 = arith.constant 0 : index
    %c0_4 = arith.constant 0 : index
    %5 = vector.load %arg1[%c0_3, %c0_4] : memref<16x128xbf16, #tpu.memory_space<vmem>>, vector<16x128xbf16>
    %cst = arith.constant dense<0.000000e+00> : vector<32x128xf32>
    %6 = tpu.matmul %4, %5, %cst {dimension_numbers = #tpu.dot_dimension_numbers<[1], [0], [0], [1], [0, 0, 1, 1], [], []>} : vector<32x16xbf16>, vector<16x128xbf16>, vector<32x128xf32> -> vector<32x128xf32>
    %7 = vector.broadcast %1 : vector<32x1xf32> to vector<32x128xf32>
    %8 = arith.addf %6, %7 : vector<32x128xf32>
    %cst_5 = arith.constant dense<0.000000e+00> : vector<128xf32>
    %9 = vector.multi_reduction <add>, %8, %cst_5 [0] : vector<32x128xf32> to vector<128xf32>
    %10 = vector.shape_cast %9 : vector<128xf32> to vector<1x128xf32>
    %cst_6 = arith.constant 3.125000e-02 : f32
    %11 = vector.broadcast %cst_6 : f32 to vector<1x128xf32>
    %12 = arith.mulf %10, %11 : vector<1x128xf32>
    %13 = arith.mulf %8, %8 : vector<32x128xf32>
    %cst_7 = arith.constant dense<0.000000e+00> : vector<128xf32>
    %14 = vector.multi_reduction <add>, %13, %cst_7 [0] : vector<32x128xf32> to vector<128xf32>
    %15 = vector.shape_cast %14 : vector<128xf32> to vector<1x128xf32>
    %cst_8 = arith.constant 3.125000e-02 : f32
    %16 = vector.broadcast %cst_8 : f32 to vector<1x128xf32>
    %17 = arith.mulf %15, %16 : vector<1x128xf32>
    %18 = arith.mulf %12, %12 : vector<1x128xf32>
    %19 = arith.subf %17, %18 : vector<1x128xf32>
    %cst_9 = arith.constant 9.99999974E-6 : f32
    %20 = vector.broadcast %cst_9 : f32 to vector<1x128xf32>
    %21 = arith.addf %19, %20 : vector<1x128xf32>
    %22 = math.rsqrt %21 : vector<1x128xf32>
    %23 = vector.broadcast %12 : vector<1x128xf32> to vector<32x128xf32>
    %24 = arith.subf %8, %23 : vector<32x128xf32>
    %25 = vector.broadcast %22 : vector<1x128xf32> to vector<32x128xf32>
    %26 = arith.mulf %24, %25 : vector<32x128xf32>
    %27 = vector.broadcast %2 : vector<32x1xf32> to vector<32x128xf32>
    %28 = arith.mulf %26, %27 : vector<32x128xf32>
    %29 = vector.broadcast %3 : vector<32x1xf32> to vector<32x128xf32>
    %30 = arith.addf %28, %29 : vector<32x128xf32>
    %31 = arith.truncf %30 : vector<32x128xf32> to vector<32x128xbf16>
    %c0_10 = arith.constant 0 : index
    %c0_11 = arith.constant 0 : index
    %32 = vector.load %arg3[%c0_10, %c0_11] : memref<32x16xbf16, #tpu.memory_space<vmem>>, vector<32x16xbf16>
    %c0_12 = arith.constant 0 : index
    %c0_13 = arith.constant 0 : index
    %33 = vector.load %arg2[%c0_12, %c0_13] : memref<16x128xbf16, #tpu.memory_space<vmem>>, vector<16x128xbf16>
    %cst_14 = arith.constant dense<0.000000e+00> : vector<32x128xf32>
    %34 = tpu.matmul %32, %33, %cst_14 {dimension_numbers = #tpu.dot_dimension_numbers<[1], [0], [0], [1], [0, 0, 1, 1], [], []>} : vector<32x16xbf16>, vector<16x128xbf16>, vector<32x128xf32> -> vector<32x128xf32>
    %35 = vector.broadcast %1 : vector<32x1xf32> to vector<32x128xf32>
    %36 = arith.addf %34, %35 : vector<32x128xf32>
    %cst_15 = arith.constant dense<0.000000e+00> : vector<128xf32>
    %37 = vector.multi_reduction <add>, %36, %cst_15 [0] : vector<32x128xf32> to vector<128xf32>
    %38 = vector.shape_cast %37 : vector<128xf32> to vector<1x128xf32>
    %cst_16 = arith.constant 3.125000e-02 : f32
    %39 = vector.broadcast %cst_16 : f32 to vector<1x128xf32>
    %40 = arith.mulf %38, %39 : vector<1x128xf32>
    %41 = arith.mulf %36, %36 : vector<32x128xf32>
    %cst_17 = arith.constant dense<0.000000e+00> : vector<128xf32>
    %42 = vector.multi_reduction <add>, %41, %cst_17 [0] : vector<32x128xf32> to vector<128xf32>
    %43 = vector.shape_cast %42 : vector<128xf32> to vector<1x128xf32>
    %cst_18 = arith.constant 3.125000e-02 : f32
    %44 = vector.broadcast %cst_18 : f32 to vector<1x128xf32>
    %45 = arith.mulf %43, %44 : vector<1x128xf32>
    %46 = arith.mulf %40, %40 : vector<1x128xf32>
    %47 = arith.subf %45, %46 : vector<1x128xf32>
    %cst_19 = arith.constant 9.99999974E-6 : f32
    %48 = vector.broadcast %cst_19 : f32 to vector<1x128xf32>
    %49 = arith.addf %47, %48 : vector<1x128xf32>
    %50 = math.rsqrt %49 : vector<1x128xf32>
    %51 = vector.broadcast %40 : vector<1x128xf32> to vector<32x128xf32>
    %52 = arith.subf %36, %51 : vector<32x128xf32>
    %53 = vector.broadcast %50 : vector<1x128xf32> to vector<32x128xf32>
    %54 = arith.mulf %52, %53 : vector<32x128xf32>
    %55 = vector.broadcast %2 : vector<32x1xf32> to vector<32x128xf32>
    %56 = arith.mulf %54, %55 : vector<32x128xf32>
    %57 = vector.broadcast %3 : vector<32x1xf32> to vector<32x128xf32>
    %58 = arith.addf %56, %57 : vector<32x128xf32>
    %59 = arith.truncf %58 : vector<32x128xf32> to vector<32x128xbf16>
    %c0_20 = arith.constant 0 : index
    %c0_21 = arith.constant 0 : index
    %60 = vector.load %arg5[%c0_20, %c0_21] : memref<128x32xbf16, #tpu.memory_space<vmem>>, vector<128x32xbf16>
    %cst_22 = arith.constant dense<0.000000e+00> : vector<128x128xf32>
    %61 = tpu.matmul %60, %59, %cst_22 {dimension_numbers = #tpu.dot_dimension_numbers<[1], [0], [0], [1], [0, 0, 1, 1], [], []>} : vector<128x32xbf16>, vector<32x128xbf16>, vector<128x128xf32> -> vector<128x128xf32>
    %c0_23 = arith.constant 0 : index
    %c0_24 = arith.constant 0 : index
    %62 = vector.load %arg6[%c0_23, %c0_24] : memref<128x32xbf16, #tpu.memory_space<vmem>>, vector<128x32xbf16>
    %cst_25 = arith.constant dense<0.000000e+00> : vector<128x128xf32>
    %63 = tpu.matmul %62, %31, %cst_25 {dimension_numbers = #tpu.dot_dimension_numbers<[1], [0], [0], [1], [0, 0, 1, 1], [], []>} : vector<128x32xbf16>, vector<32x128xbf16>, vector<128x128xf32> -> vector<128x128xf32>
    %64 = arith.mulf %61, %63 : vector<128x128xf32>
    %65 = arith.truncf %64 : vector<128x128xf32> to vector<128x128xbf16>
    %c0_26 = arith.constant 0 : index
    %c0_27 = arith.constant 0 : index
    %66 = vector.load %arg7[%c0_26, %c0_27] : memref<4x128xbf16, #tpu.memory_space<vmem>>, vector<4x128xbf16>
    %cst_28 = arith.constant dense<0.000000e+00> : vector<4x128xf32>
    %67 = tpu.matmul %66, %65, %cst_28 {dimension_numbers = #tpu.dot_dimension_numbers<[1], [0], [0], [1], [0, 0, 1, 1], [], []>} : vector<4x128xbf16>, vector<128x128xbf16>, vector<4x128xf32> -> vector<4x128xf32>
    %c0_29 = arith.constant 0 : index
    %c0_30 = arith.constant 0 : index
    %68 = vector.load %arg8[%c0_29, %c0_30] : memref<4x128xf32, #tpu.memory_space<vmem>>, vector<4x128xf32>
    tpu.vector_store %arg8[%c0_29, %c0_30], %67 {strides = array<i32>} : memref<4x128xf32, #tpu.memory_space<vmem>>, vector<4x128xf32>,
    return
  }
  func.func @transform_0(%arg0: i32) -> (i32, i32) {
    %c0_i32 = arith.constant 0 : i32
    %c0_i32_0 = arith.constant 0 : i32
    return %c0_i32, %arg0 : i32, i32
  }
  func.func @transform_1(%arg0: i32) -> (i32, i32) {
    %c0_i32 = arith.constant 0 : i32
    %c0_i32_0 = arith.constant 0 : i32
    return %c0_i32, %arg0 : i32, i32
  }
  func.func @transform_2(%arg0: i32) -> (i32, i32) {
    %c0_i32 = arith.constant 0 : i32
    %c0_i32_0 = arith.constant 0 : i32
    %c0_i32_1 = arith.constant 0 : i32
    return %c0_i32, %c0_i32_0 : i32, i32
  }
  func.func @transform_3(%arg0: i32) -> (i32, i32) {
    %c0_i32 = arith.constant 0 : i32
    %c0_i32_0 = arith.constant 0 : i32
    %c0_i32_1 = arith.constant 0 : i32
    return %c0_i32, %c0_i32_0 : i32, i32
  }
  func.func @transform_4(%arg0: i32) -> (i32, i32) {
    %c0_i32 = arith.constant 0 : i32
    %c0_i32_0 = arith.constant 0 : i32
    %c0_i32_1 = arith.constant 0 : i32
    return %c0_i32, %c0_i32_0 : i32, i32
  }
  func.func @transform_5(%arg0: i32) -> (i32, i32) {
    %c0_i32 = arith.constant 0 : i32
    %c0_i32_0 = arith.constant 0 : i32
    %c0_i32_1 = arith.constant 0 : i32
    return %c0_i32, %c0_i32_0 : i32, i32
  }
  func.func @transform_6(%arg0: i32) -> (i32, i32) {
    %c0_i32 = arith.constant 0 : i32
    %c0_i32_0 = arith.constant 0 : i32
    %c0_i32_1 = arith.constant 0 : i32
    return %c0_i32, %c0_i32_0 : i32, i32
  }
  func.func @transform_7(%arg0: i32) -> (i32, i32) {
    %c0_i32 = arith.constant 0 : i32
    %c0_i32_0 = arith.constant 0 : i32
    return %c0_i32, %arg0 : i32, i32
  }
}

</mosaic_0001>

<bundles_post_ra>
// kernel: tpu_custom_call.1
= control target key start
LH: loop header
LB: loop body
LE: loop exit
PB: predicated region body
PF: predicated region fallthrough
CT: control target
= control target key end

     0   :  { %12 = vsyncpa [#allocation5], 0  ;;  %s1806_s0 = inlined_call_operand.vmem [shape: bf16[16,256], index: 0, kind: input, shape index: {}]   ;;  %s1807_s1 = inlined_call_operand.vmem [shape: bf16[16,256], index: 1, kind: input, shape index: {}]   ;;  %s1808_s2 = inlined_call_operand.vmem [shape: bf16[32,16], index: 2, kind: input, shape index: {}]   ;;  %s1809_s3 = inlined_call_operand.vmem [shape: f32[32,3], index: 3, kind: input, shape index: {}]   ;;  %s1810_s4 = inlined_call_operand.vmem [shape: bf16[128,32], index: 4, kind: input, shape index: {}]   ;;  %s1811_s5 = inlined_call_operand.vmem [shape: bf16[128,32], index: 5, kind: input, shape index: {}]   ;;  %s1812_s6 = inlined_call_operand.vmem [shape: bf16[4,128], index: 6, kind: input, shape index: {}]   ;;  %s1813_s7 = inlined_call_operand.hbm [shape: f32[4,256], index: 7, kind: output, shape index: {}]  }
   0x1   :  { %14 = vsyncpa [#allocation5 + $0x1], 0  ;;  %s1537_s24 = smov 0   ;;  %s1539_s25 = smov 0  }
   0x2   :  { %s1541_s26 = smov 0   ;;  %s1543_s27 = smov 0  }
   0x3 LB: > { %s1188_s28 = sadd.s32 4294967295, %s1489_s27   ;;  %s1189_s29 = sadd.s32 4294967294, %s1489_s27   ;;  %s1489_s27 = sphi %s1543_s27, %s1820_s27   ;;  %s1485_s26 = sphi %s1541_s26, %s1819_s26   ;;  %s1481_s25 = sphi %s1539_s25, %s1818_s25   ;;  %s1477_s24 = sphi %s1537_s24, %s1817_s24  }
   0x4   : > { %s1560_s30 = sadd.s32 1, %s1489_s27   ;;  %s27_s8 = sadd.s32 1, %s1485_s26 }
   0x5   : > { %s24_s9 = ssub.s32 %s1489_s27, %s1560_s30  ;;  %p34_p0 = scmp.ne.s32.totalorder %s1485_s26, %s1481_s25 }
   0x6   : > { %p25_p1 = scmp.eq.s32.totalorder %s24_s9, 0  ;;  %p35_p2 = scmp.eq.s32.totalorder %s1489_s27, 0 }
   0x7   : > { %p195_p3 = scmp.eq.s32.totalorder %s1188_s28, 1  ;;  %p200_p4 = scmp.ne.s32.totalorder %s1481_s25, %s1477_s24 }
   0x8   : > { %s1573_s10 = scalar_select %p25_p1, %s1485_s26, %s27_s8  }
   0x9   : > { %p1575_p5 = por %p35_p2, %p34_p0  ;;  %p1579_p6 = por %p195_p3, %p34_p0 }
   0xa   : > { %p201_p7 = scmp.eq.s32.totalorder %s1189_s29, 1  ;;  %p1191_p9 = scmp.ge.s32.totalorder %s1489_s27, 2 }
   0xc   : > { %p1583_p8 = por %p201_p7, %p200_p4  ;;  %232 = sbr.rel (%p1191_p9) target bundleno = 33 (0x21), region = 36 }
  0x13   : > { %235 = sbr.rel (!%p1575_p5) target bundleno = 26 (0x1a), region = 40  ;;  %s237_s14 = sand.u32 (%p1575_p5), 1, %s1485_s26  }
  0x14   : > { %s1193_s15 = sshll.u32 (%p1575_p5), %s1489_s27, 2  ;;  %s1192_s16 = sshll.u32 (%p1575_p5), %s237_s14, 3 }
  0x15   : > { %s241_s19 = scalar_lea.vmem (%p1575_p5), %s1806_s0, %s1193_s15  ;;  %s239_s20 = scalar_lea.vmem (%p1575_p5), [#allocation2], %s1192_s16 }
  0x16   : > { %v257_v0 = vld [vmem:[%s241_s19] sm:$0xf] (%p1575_p5)  ;;  %v259_v1 = vld [vmem:[%s241_s19 + $0x8] sm:$0xf] (%p1575_p5) }
  0x17   : > { %258 = vst [vmem:[%s239_s20] sm:$0xf] (%p1575_p5), %v257_v0  ;;  %260 = vst [vmem:[%s239_s20 + $0x4] sm:$0xf] (%p1575_p5), %v259_v1 }
  0x1a PF: > { %287 = sbr.rel (!%p1575_p5) target bundleno = 33 (0x21), region = 81  ;;  %s289_s21 = sand.u32 (%p1575_p5), 1, %s1485_s26  }
  0x1b   : > { %s1195_s22 = sshll.u32 (%p1575_p5), %s1489_s27, 2  ;;  %s1194_s23 = sshll.u32 (%p1575_p5), %s289_s21, 3 }
  0x1c   : > { %s293_s9 = scalar_lea.vmem (%p1575_p5), %s1807_s1, %s1195_s22  ;;  %s291_s14 = scalar_lea.vmem (%p1575_p5), [#allocation3], %s1194_s23 }
  0x1d   : > { %v309_v2 = vld [vmem:[%s293_s9] sm:$0xf] (%p1575_p5)  ;;  %v311_v3 = vld [vmem:[%s293_s9 + $0x8] sm:$0xf] (%p1575_p5) }
  0x1e   : > { %310 = vst [vmem:[%s291_s14] sm:$0xf] (%p1575_p5), %v309_v2  ;;  %312 = vst [vmem:[%s291_s14 + $0x4] sm:$0xf] (%p1575_p5), %v311_v3 }
  0x21 PF: > { %p1196_p10 = scmp.ge.s32.totalorder %s1489_s27, 1  ;;  %p338_p11 = scmp.lt.s32.totalorder %s1489_s27, 3 }
  0x23   : > { %p339_p12 = pnand %p1196_p10, %p338_p11 }
  0x24   : > { %s1607_s11 = sand.u32 (!%p339_p12), 1, %s1481_s25   ;;  %v1405_v4 = vld [vmem:[%s1808_s2] sm:$0xff] (!%p339_p12)   ;;  %vm434_vm0 = vcmask (!%p339_p12), 130048   ;;  %v390_v6 = vld [vmem:[%s1809_s3 + $0x10] sm:$0xff] (!%p339_p12)  ;;  %v1406_v8 = vld [vmem:[%s1808_s2 + $0x8] sm:$0xff] (!%p339_p12)   ;;  %v1491_v9 = vmov (!%p339_p12), 0  }
  0x25   : > { %342 = sbr.rel (%p339_p12) target bundleno = 792 (0x318), region = 122  ;;  %s1197_s17 = sshll.u32 (!%p339_p12), %s1607_s11, 3  ;;  %1281 = vmatprep.mubr.msk.bf16.mxu0 (!%p339_p12), %vm434_vm0, %v1405_v4  ;;  %1287 = vmatprep.mubr.msk.bf16.mxu1 (!%p339_p12), %vm434_vm0, %v1405_v4  ;;  %v388_v5 = vld [vmem:[%s1809_s3] sm:$0xff] (!%p339_p12)  ;;  %v389_v11 = vld [vmem:[%s1809_s3 + $0x8] sm:$0xff] (!%p339_p12)  ;;  %v391_v12 = vld [vmem:[%s1809_s3 + $0x18] sm:$0xff] (!%p339_p12)  ;;  %v1492_v13 = vmov (!%p339_p12), 1  }
  0x26   : > { %s347_s22 = scalar_lea.vmem (!%p339_p12), [#allocation2], %s1197_s17  ;;  %1395 = vset.pattern.permute.xlu0 (!%p339_p12), %v1491_v9  ;;  %1396 = vset.pattern.permute.xlu1 (!%p339_p12), %v1491_v9  ;;  %s354_s8 = scalar_lea.vmem (!%p339_p12), [#allocation3], %s1197_s17  ;;  %v1493_v14 = vmov (!%p339_p12), 2   ;;  %v1407_v15 = vld [vmem:[%s1810_s4] sm:$0xff] (!%p339_p12)   ;;  %vm727_vm1 = vcmask (!%p339_p12), 261120   ;;  %vm1495_vm2 = vmmov (!%p339_p12), 0  }
  0x27   : > { %v1403_v7 = vld [vmem:[%s347_s22] sm:$0xff] (!%p339_p12)   ;;  %v1404_v10 = vld [vmem:[%s354_s8] sm:$0xff] (!%p339_p12)   ;;  %400 = vperm.xlu0 (!%p339_p12), %1395, %v388_v5   ;;  %410 = vperm.xlu1 (!%p339_p12), %1396, %v390_v6   ;;  %s1199_s8 = sshll.u32 (!%p339_p12), %s1607_s11, 2  ;;  %s1241_s15 = sshll.u32 (!%p339_p12), %s1188_s28, 6 }
  0x28   : > { %1279 = vmatprep.subr.bf16.mxu0 (!%p339_p12), %v1403_v7  ;;  %1285 = vmatprep.subr.bf16.mxu1 (!%p339_p12), %v1404_v10  ;;  %v1408_v16 = vld [vmem:[%s1811_s5] sm:$0xff] (!%p339_p12)   ;;  %s386_s9 = scalar_lea.vmem (!%p339_p12), [#allocation4], %s1199_s8  ;;  %s1764_s18 = scalar_lea.hbm (!%p339_p12), %s1813_s7, %s1241_s15 }
  0x29   : > { %1280 = vmatpush3.bf16.msra.mxu0 (!%p339_p12), %v1403_v7  ;;  %1286 = vmatpush3.bf16.msra.mxu1 (!%p339_p12), %v1404_v10  ;;  %s1106_s14 = sshll.u32 (!%p339_p12), %s386_s9, 4  ;;  %s1093_s19 = scalar_lea.sflag (!%p339_p12), [#allocation5], %s1607_s11  ;;  %s1759_s14 = int_to_ptr.vmem [resolvable:$true] %s1106_s14 }
  0x2a   : > { %s1427_s20 = scalar_lea.vmem (!%p339_p12), %s1759_s14, 64  ;;  %s1496_s28 = smov (!%p339_p12), [#allocation4]  }
  0x2b   : > { %405 = vperm.xlu0 (!%p339_p12), %1395, %v389_v11   ;;  %415 = vperm.xlu1 (!%p339_p12), %1396, %v391_v12   ;;  %p1428_p13 = scmp.ne.s32.totalorder (!%p339_p12), %s1759_s14, %s1427_s20  ;;  %s1431_s21 = sshll.u32 (!%p339_p12), %s1496_s28, 4  ;;  %s1432_s21 = int_to_ptr.vmem [resolvable:$false] %s1431_s21 }
  0x2c   : > { %1282 = vmatmul.mubr.msk.bf16.vlgmr.msra.gmra.mrb[0].mxu0 %vm434_vm0, %v1406_v8  ;;  %1288 = vmatmul.mubr.msk.bf16.vlgmr.msra.gmra.mrb[0].mxu1 %vm434_vm0, %v1406_v8  ;;  %s1433_s22 = scalar_lea.vmem %s1432_s21, 128  ;;  %p1434_p2 = scmp.lt.s32.totalorder %s1759_s14, %s1432_s21 }
  0x2d   : > { %1295 = vmatprep.mubr.msk.bf16.mxu0 %vm727_vm1, %v1407_v15  ;;  %1315 = vmatprep.mubr.msk.bf16.mxu1 %vm727_vm1, %v1408_v16  ;;  %p1429_p0 = pnand %p1428_p13, %p1579_p6  ;;  %p1435_p3 = scmp.lt.s32.totalorder %s1433_s22, %s1427_s20 }
  0x2f   : > { %1398 = vset.pattern.permute.xlu1 %v1492_v13  ;;  %1397 = vset.pattern.permute.xlu0 %v1492_v13  ;;  %p1430_p1 = pneg %p1429_p0  ;;  %p1436_p4 = por %p1435_p3, %p1434_p2 }
  0x30   : > { %531 = vperm.xlu1 %1398, %v389_v11   ;;  %527 = vperm.xlu0 %1397, %v388_v5  }
  0x31   : > { %p1437_p5 = pnand %p1436_p4, %p1430_p1 }
  0x34   : > { %1399 = vset.pattern.permute.xlu1 %v1493_v14  ;;  %1400 = vset.pattern.permute.xlu0 %v1493_v14 }
  0x35   : > { %547 = vperm.xlu1 %1399, %v388_v5   ;;  %551 = vperm.xlu0 %1400, %v389_v11  }
  0x39   : > { %1401 = vset.pattern.permute.xlu1 %v1492_v13  ;;  %555 = vperm.xlu0 %1400, %v390_v6  }
  0x3a   : > { %535 = vperm.xlu1 %1401, %v390_v6  }
  0x3e   : > { %539 = vperm.xlu1 %1401, %v391_v12  }
  0x42   : > { %1402 = vset.pattern.permute.xlu1 %v1493_v14 }
  0x43   : > { %559 = vperm.xlu1 %1402, %v391_v12  }
  0xa6   : > { %v401_v17 = vpop.permute.xlu0 %400  ;;  %v411_v18 = vpop.permute.xlu1 %410 }
  0xaa   : > { %v406_v19 = vpop.permute.xlu0 %405  ;;  %v416_v21 = vpop.permute.xlu1 %415 }
  0xaf   : > { %v532_v9 = vpop.permute.xlu1 %531 }
  0xff   : > { %v1283_v20 = vpop.f32.mrb[0].mxu0  ;;  %v1289_v22 = vpop.f32.mrb[0].mxu1 }
 0x100   : > { %v475_v23 = vpop.f32.mrb[1].mxu0  ;;  %v610_v25 = vpop.f32.mrb[1].mxu1  ;;  %v1644_v30 = vadd.f32 %v1283_v20, %v411_v18  ;;  %v1648_v33 = vadd.f32 %v1289_v22, %v411_v18 }
 0x101   : > { %v1640_v24 = vadd.f32 %v475_v23, %v401_v17  ;;  %v1284_v26 = vpop.f32.mrb[2].mxu0  ;;  %v1642_v27 = vadd.f32 %v610_v25, %v401_v17  ;;  %v1290_v28 = vpop.f32.mrb[2].mxu1 }
 0x102   : > { %v478_v29 = vpop.f32.mrb[3].mxu0  ;;  %v613_v32 = vpop.f32.mrb[3].mxu1  ;;  %v1654_v36 = vadd.f32 %v1284_v26, %v416_v21  ;;  %v1662_v40 = vadd.f32 %v1290_v28, %v416_v21  ;;  %v502_v43 = vmul.f32 %v1644_v30, %v1644_v30  ;;  %v637_v46 = vmul.f32 %v1648_v33, %v1648_v33 }
 0x103   : > { %v1646_v31 = vadd.f32 %v478_v29, %v406_v19  ;;  %v1650_v34 = vadd.f32 %v613_v32, %v406_v19  ;;  %v500_v35 = vmul.f32 %v1640_v24, %v1640_v24  ;;  %v635_v39 = vmul.f32 %v1642_v27, %v1642_v27  ;;  %v548_v23 = vpop.permute.xlu1 %547 }
 0x104   : > { %v503_v49 = vmul.f32 %v1654_v36, %v1654_v36  ;;  %v638_v52 = vmul.f32 %v1662_v40, %v1662_v40 }
 0x105   : > { %v490_v37 = vadd.f32 %v1646_v31, %v1640_v24  ;;  %v501_v38 = vmul.f32 %v1646_v31, %v1646_v31  ;;  %v625_v41 = vadd.f32 %v1650_v34, %v1642_v27  ;;  %v636_v42 = vmul.f32 %v1650_v34, %v1650_v34 }
 0x107   : > { %v491_v44 = vadd.f32 %v490_v37, %v1644_v30  ;;  %v504_v45 = vadd.f32 %v501_v38, %v500_v35  ;;  %v626_v47 = vadd.f32 %v625_v41, %v1648_v33  ;;  %v639_v48 = vadd.f32 %v636_v42, %v635_v39 }
 0x109   : > { %v492_v50 = vadd.f32 %v491_v44, %v1654_v36  ;;  %v505_v51 = vadd.f32 %v504_v45, %v502_v43  ;;  %v627_v53 = vadd.f32 %v626_v47, %v1662_v40  ;;  %v640_v54 = vadd.f32 %v639_v48, %v637_v46  ;;  %v528_v44 = vpop.permute.xlu0 %527 }
 0x10b   : > { %v493_v55 = vrot.slane %v492_v50, 4  ;;  %v506_v56 = vadd.f32 %v505_v51, %v503_v49  ;;  %v628_v57 = vrot.slane %v627_v53, 4  ;;  %v641_v58 = vadd.f32 %v640_v54, %v638_v52 }
 0x10d   : > { %v494_v59 = vadd.f32 %v493_v55, %v492_v50  ;;  %v507_v60 = vrot.slane %v506_v56, 4  ;;  %v629_v61 = vadd.f32 %v628_v57, %v627_v53  ;;  %v642_v62 = vrot.slane %v641_v58, 4 }
 0x10f   : > { %v495_v63 = vrot.slane %v494_v59, 2  ;;  %v508_v0 = vadd.f32 %v507_v60, %v506_v56  ;;  %v630_v1 = vrot.slane %v629_v61, 2  ;;  %v643_v2 = vadd.f32 %v642_v62, %v641_v58 }
 0x111   : > { %v496_v3 = vadd.f32 %v495_v63, %v494_v59  ;;  %v509_v4 = vrot.slane %v508_v0, 2  ;;  %v631_v5 = vadd.f32 %v630_v1, %v629_v61  ;;  %v644_v6 = vrot.slane %v643_v2, 2 }
 0x113   : > { %v497_v7 = vrot.slane %v496_v3, 1  ;;  %v510_v8 = vadd.f32 %v509_v4, %v508_v0  ;;  %v632_v10 = vrot.slane %v631_v5, 1  ;;  %v645_v11 = vadd.f32 %v644_v6, %v643_v2 }
 0x115   : > { %v498_v12 = vadd.f32 %v497_v7, %v496_v3  ;;  %v511_v13 = vrot.slane %v510_v8, 1  ;;  %v633_v14 = vadd.f32 %v632_v10, %v631_v5  ;;  %v646_v15 = vrot.slane %v645_v11, 1  ;;  %v1409_v10 = vld [vmem:[%s1810_s4 + $0x8] sm:$0xff]  }
 0x117   : > { %v499_v16 = vmul.f32 0.03125, %v498_v12  ;;  %v512_v17 = vadd.f32 %v511_v13, %v510_v8  ;;  %v634_v18 = vmul.f32 0.03125, %v633_v14  ;;  %v647_v19 = vadd.f32 %v646_v15, %v645_v11  ;;  %v1412_v11 = vld [vmem:[%s1811_s5 + $0x10] sm:$0xff]   ;;  %v1414_v13 = vld [vmem:[%s1811_s5 + $0x18] sm:$0xff]   ;;  %v1416_v15 = vld [vmem:[%s1811_s5 + $0x20] sm:$0xff]  }
 0x118   : > { %v1411_v12 = vld [vmem:[%s1810_s4 + $0x10] sm:$0xff]   ;;  %v1413_v14 = vld [vmem:[%s1810_s4 + $0x18] sm:$0xff]  }
 0x119   : > { %v513_v20 = vmul.f32 0.03125, %v512_v17  ;;  %v514_v21 = vmul.f32 %v499_v16, %v499_v16  ;;  %v519_v22 = vsub.f32 %v1646_v31, %v499_v16  ;;  %v520_v25 = vsub.f32 %v1644_v30, %v499_v16  ;;  %v536_v30 = vpop.permute.xlu1 %535  ;;  %v1418_v17 = vld [vmem:[%s1811_s5 + $0x28] sm:$0xff]  }
 0x11a   : > { %v648_v26 = vmul.f32 0.03125, %v647_v19  ;;  %v649_v28 = vmul.f32 %v634_v18, %v634_v18  ;;  %v654_v29 = vsub.f32 %v1650_v34, %v634_v18  ;;  %v655_v32 = vsub.f32 %v1648_v33, %v634_v18  ;;  %v552_v34 = vpop.permute.xlu0 %551  ;;  %v1420_v19 = vld [vmem:[%s1811_s5 + $0x30] sm:$0xff]  }
 0x11b   : > { %v515_v35 = vsub.f32 %v513_v20, %v514_v21  ;;  %v518_v37 = vsub.f32 %v1640_v24, %v499_v16  ;;  %v653_v38 = vsub.f32 %v1642_v27, %v634_v18  ;;  %v521_v39 = vsub.f32 %v1654_v36, %v499_v16  ;;  %v1415_v16 = vld [vmem:[%s1810_s4 + $0x20] sm:$0xff]   ;;  %v1419_v20 = vld [vmem:[%s1810_s4 + $0x30] sm:$0xff]   ;;  %v1422_v21 = vld [vmem:[%s1811_s5 + $0x38] sm:$0xff]  }
 0x11c   : > { %v650_v41 = vsub.f32 %v648_v26, %v649_v28  ;;  %v656_v42 = vsub.f32 %v1662_v40, %v634_v18  ;;  %v1417_v18 = vld [vmem:[%s1810_s4 + $0x28] sm:$0xff]  }
 0x11d   : > { %v516_v31 = vadd.f32 1e-05, %v515_v35  ;;  %v540_v45 = vpop.permute.xlu1 %539 }
 0x11e   : > { %v651_v43 = vadd.f32 1e-05, %v650_v41  ;;  %v556_v40 = vpop.permute.xlu0 %555 }
 0x11f   : > { %1423 = vrsqrt.f32 %v516_v31 }
 0x120   : > { %1425 = vrsqrt.f32 %v651_v43 }
 0x121   : > { %v560_v52 = vpop.permute.xlu1 %559 }
 0x129   : > { %v1424_v46 = vpop.eup %1423 }
 0x12a   : > { %v1426_v33 = vpop.eup %1425  ;;  %v523_v47 = vmul.f32 %v1424_v46, %v519_v22  ;;  %v524_v48 = vmul.f32 %v1424_v46, %v520_v25  ;;  %v522_v24 = vmul.f32 %v1424_v46, %v518_v37  ;;  %v525_v49 = vmul.f32 %v1424_v46, %v521_v39  ;;  %v1421_v22 = vld [vmem:[%s1810_s4 + $0x38] sm:$0xff]  }
 0x12b   : > { %v658_v27 = vmul.f32 %v1426_v33, %v654_v29  ;;  %v659_v50 = vmul.f32 %v1426_v33, %v655_v32  ;;  %v657_v36 = vmul.f32 %v1426_v33, %v653_v38  ;;  %v660_v51 = vmul.f32 %v1426_v33, %v656_v42 }
 0x12c   : > { %v543_v53 = vmul.f32 %v532_v9, %v523_v47  ;;  %v544_v54 = vmul.f32 %v536_v30, %v524_v48  ;;  %v542_v55 = vmul.f32 %v528_v44, %v522_v24  ;;  %v545_v56 = vmul.f32 %v540_v45, %v525_v49 }
 0x12d   : > { %v662_v57 = vmul.f32 %v658_v27, %v532_v9  ;;  %v663_v58 = vmul.f32 %v659_v50, %v536_v30  ;;  %v661_v59 = vmul.f32 %v657_v36, %v528_v44  ;;  %v664_v60 = vmul.f32 %v660_v51, %v540_v45  ;;  %v1410_v9 = vld [vmem:[%s1811_s5 + $0x8] sm:$0xff]  }
 0x12e   : > { %v562_v61 = vadd.f32 %v548_v23, %v542_v55  ;;  %v563_v62 = vadd.f32 %v552_v34, %v543_v53  ;;  %v565_v63 = vadd.f32 %v560_v52, %v545_v56  ;;  %v564_v0 = vadd.f32 %v556_v40, %v544_v54 }
 0x12f   : > { %v665_v1 = vadd.f32 %v661_v59, %v548_v23  ;;  %v666_v2 = vadd.f32 %v662_v57, %v552_v34  ;;  %v668_v3 = vadd.f32 %v664_v60, %v560_v52  ;;  %v667_v4 = vadd.f32 %v663_v58, %v556_v40 }
 0x130   : > { %v566_v5 = vpack.c.bf16 %v563_v62, %v562_v61  ;;  %v567_v6 = vpack.c.bf16 %v565_v63, %v564_v0  ;;  %v1494_v23 = vmov 0.0  }
 0x131   : > { %v669_v7 = vpack.c.bf16 %v666_v2, %v665_v1  ;;  %v670_v8 = vpack.c.bf16 %v668_v3, %v667_v4 }
 0x132   : > { %1311 = vmatprep.subr.bf16.mxu1 %v566_v5 }
 0x133   : > { %1291 = vmatprep.subr.bf16.mxu0 %v669_v7  ;;  %1312 = vmatpush3.bf16.msra.mxu1 %v566_v5 }
 0x134   : > { %1292 = vmatpush3.bf16.msra.mxu0 %v669_v7  ;;  %1313 = vmatprep.subr.bf16.mxu1 %v567_v6 }
 0x135   : > { %1293 = vmatprep.subr.bf16.mxu0 %v670_v8 }
 0x137   : > { %1314 = vmatpush3.bf16.msra.mxu1 %v567_v6 }
 0x138   : > { %1294 = vmatpush3.bf16.msra.mxu0 %v670_v8 }
 0x139   : > { %1331 = vmatprep.subr.bf16.mxu0 %v1494_v23 }
 0x13a   : > { %1316 = vmatmul.mubr.msk.bf16.vlgmr.msra.gmra.mrb[4].mxu1 %vm727_vm1, %v1410_v9 }
 0x13b   : > { %1296 = vmatmul.mubr.msk.bf16.vlgmr.msra.gmra.mrb[4].mxu0 %vm727_vm1, %v1409_v10  ;;  %1319 = vmatprep.mubr.msk.bf16.mxu1 %vm727_vm1, %v1412_v11 }
 0x13c   : > { %1299 = vmatprep.mubr.msk.bf16.mxu0 %vm727_vm1, %v1411_v12 }
 0x142   : > { %1320 = vmatmul.mubr.msk.bf16.gmra.mrb[8].mxu1 %vm727_vm1, %v1414_v13 }
 0x143   : > { %1300 = vmatmul.mubr.msk.bf16.gmra.mrb[8].mxu0 %vm727_vm1, %v1413_v14  ;;  %1323 = vmatprep.mubr.msk.bf16.mxu1 %vm727_vm1, %v1416_v15 }
 0x144   : > { %1303 = vmatprep.mubr.msk.bf16.mxu0 %vm727_vm1, %v1415_v16  ;;  %v1050_v16 = vld [vmem:[%s1812_s6] sm:$0x3] }
 0x14a   : > { %1324 = vmatmul.mubr.msk.bf16.gmra.mrb[12].mxu1 %vm727_vm1, %v1418_v17 }
 0x14b   : > { %1304 = vmatmul.mubr.msk.bf16.gmra.mrb[12].mxu0 %vm727_vm1, %v1417_v18  ;;  %1327 = vmatprep.mubr.msk.bf16.mxu1 %vm727_vm1, %v1420_v19 }
 0x14c   : > { %1307 = vmatprep.mubr.msk.bf16.mxu0 %vm727_vm1, %v1419_v20 }
 0x152   : > { %1328 = vmatmul.mubr.msk.bf16.gmra.mrb[16].mxu1 %vm727_vm1, %v1422_v21 }
 0x153   : > { %1308 = vmatmul.mubr.msk.bf16.gmra.mrb[16].mxu0 %vm727_vm1, %v1421_v22 }
 0x154   : > { %1347 = vmatprep.mubr.msk.bf16.mxu0 %vm1495_vm2, %v1494_v23 }
 0x20d   : > { %v1317_v25 = vpop.f32.mrb[4].mxu1 }
 0x20e   : > { %v1297_v26 = vpop.f32.mrb[4].mxu0  ;;  %v963_v28 = vpop.f32.mrb[5].mxu1 }
 0x20f   : > { %v1028_v29 = vmul.f32 %v1317_v25, %v1297_v26  ;;  %v786_v32 = vpop.f32.mrb[5].mxu0  ;;  %v1318_v35 = vpop.f32.mrb[6].mxu1 }
 0x210   : > { %v1026_v37 = vmul.f32 %v963_v28, %v786_v32  ;;  %v1298_v38 = vpop.f32.mrb[6].mxu0  ;;  %v966_v39 = vpop.f32.mrb[7].mxu1 }
 0x211   : > { %v1029_v41 = vmul.f32 %v1318_v35, %v1298_v38  ;;  %v789_v42 = vpop.f32.mrb[7].mxu0 }
 0x212   : > { %v1027_v31 = vmul.f32 %v966_v39, %v789_v42 }
 0x213   : > { %v1043_v43 = vpack.c.bf16 %v1029_v41, %v1028_v29 }
 0x214   : > { %v1042_v30 = vpack.c.bf16 %v1027_v31, %v1026_v37 }
 0x215   : > { %v1321_v44 = vpop.f32.mrb[8].mxu1 }
 0x216   : > { %v1301_v45 = vpop.f32.mrb[8].mxu0  ;;  %1332 = vmatpush3.bf16.msra.mxu0 %v1042_v30  ;;  %v979_v34 = vpop.f32.mrb[9].mxu1 }
 0x217   : > { %v1032_v46 = vmul.f32 %v1321_v44, %v1301_v45  ;;  %v802_v33 = vpop.f32.mrb[9].mxu0  ;;  %v1322_v47 = vpop.f32.mrb[10].mxu1  ;;  %1333 = vmatprep.subr.bf16.mxu0 %v1494_v23 }
 0x218   : > { %v1030_v48 = vmul.f32 %v979_v34, %v802_v33  ;;  %v1302_v24 = vpop.f32.mrb[10].mxu0  ;;  %v982_v49 = vpop.f32.mrb[11].mxu1 }
 0x219   : > { %v1033_v27 = vmul.f32 %v1322_v47, %v1302_v24  ;;  %v805_v50 = vpop.f32.mrb[11].mxu0 }
 0x21a   : > { %v1031_v36 = vmul.f32 %v982_v49, %v805_v50  ;;  %1334 = vmatpush3.bf16.msra.mxu0 %v1043_v43 }
 0x21b   : > { %v1045_v51 = vpack.c.bf16 %v1033_v27, %v1032_v46  ;;  %1335 = vmatprep.subr.bf16.mxu0 %v1494_v23 }
 0x21c   : > { %v1044_v52 = vpack.c.bf16 %v1031_v36, %v1030_v48 }
 0x21d   : > { %v1325_v40 = vpop.f32.mrb[12].mxu1 }
 0x21e   : > { %v1305_v53 = vpop.f32.mrb[12].mxu0  ;;  %1336 = vmatpush3.bf16.msra.mxu0 %v1044_v52  ;;  %v995_v54 = vpop.f32.mrb[13].mxu1 }
 0x21f   : > { %v1036_v55 = vmul.f32 %v1325_v40, %v1305_v53  ;;  %v818_v56 = vpop.f32.mrb[13].mxu0  ;;  %v1326_v57 = vpop.f32.mrb[14].mxu1  ;;  %1337 = vmatprep.subr.bf16.mxu0 %v1494_v23 }
 0x220   : > { %v1034_v58 = vmul.f32 %v995_v54, %v818_v56  ;;  %v1306_v59 = vpop.f32.mrb[14].mxu0  ;;  %v998_v60 = vpop.f32.mrb[15].mxu1 }
 0x221   : > { %v1037_v61 = vmul.f32 %v1326_v57, %v1306_v59  ;;  %v821_v62 = vpop.f32.mrb[15].mxu0 }
 0x222   : > { %v1035_v63 = vmul.f32 %v998_v60, %v821_v62  ;;  %1338 = vmatpush3.bf16.msra.mxu0 %v1045_v51 }
 0x223   : > { %v1047_v0 = vpack.c.bf16 %v1037_v61, %v1036_v55  ;;  %1339 = vmatprep.subr.bf16.mxu0 %v1494_v23 }
 0x224   : > { %v1046_v1 = vpack.c.bf16 %v1035_v63, %v1034_v58 }
 0x225   : > { %v1329_v2 = vpop.f32.mrb[16].mxu1 }
 0x226   : > { %v1309_v3 = vpop.f32.mrb[16].mxu0  ;;  %1340 = vmatpush3.bf16.msra.mxu0 %v1046_v1  ;;  %v1011_v4 = vpop.f32.mrb[17].mxu1 }
 0x227   : > { %v1040_v5 = vmul.f32 %v1329_v2, %v1309_v3  ;;  %v834_v6 = vpop.f32.mrb[17].mxu0  ;;  %v1330_v7 = vpop.f32.mrb[18].mxu1  ;;  %1341 = vmatprep.subr.bf16.mxu0 %v1494_v23 }
 0x228   : > { %v1038_v8 = vmul.f32 %v1011_v4, %v834_v6  ;;  %v1310_v9 = vpop.f32.mrb[18].mxu0  ;;  %v1014_v10 = vpop.f32.mrb[19].mxu1 }
 0x229   : > { %v1041_v11 = vmul.f32 %v1330_v7, %v1310_v9  ;;  %v837_v12 = vpop.f32.mrb[19].mxu0 }
 0x22a   : > { %v1039_v13 = vmul.f32 %v1014_v10, %v837_v12  ;;  %1342 = vmatpush3.bf16.msra.mxu0 %v1047_v0 }
 0x22b   : > { %v1049_v14 = vpack.c.bf16 %v1041_v11, %v1040_v5  ;;  %1343 = vmatprep.subr.bf16.mxu0 %v1494_v23 }
 0x22c   : > { %v1048_v15 = vpack.c.bf16 %v1039_v13, %v1038_v8 }
 0x22e   : > { %1344 = vmatpush3.bf16.msra.mxu0 %v1048_v15 }
 0x22f   : > { %1345 = vmatprep.subr.bf16.mxu0 %v1494_v23 }
 0x232   : > { %1346 = vmatpush3.bf16.msra.mxu0 %v1049_v14 }
 0x235   : > { %1348 = vmatmul.mubr.bf16.vlgmr.msra.gmra.mrb[20].mxu0 %v1050_v16 }
 0x308   : > { %v1085_v17 = vpop.f32.mrb[20].mxu0 }
 0x309   : > { %1091 = vst [vmem:[%s386_s9] sm:$0xf] %v1085_v17  ;;  %v1349_v18 = vpop.f32.mrb[21].mxu0 }
 0x30a   : > { %v1088_v19 = vpop.f32.mrb[22].mxu0 }
 0x30b   : > { %1440 = shalt.err (!%p1437_p5)
}
 0x30c   : > { %s1441_s11 = scalar_lea.hbm %s1764_s18, 64  ;;  %s1445_s8 = scalar_lea.hbm %s1813_s7, 128 }
 0x30d   : > { %p1442_p7 = scmp.ne.s32.totalorder %s1764_s18, %s1441_s11  ;;  %p1446_p12 = scmp.lt.u32.totalorder %s1764_s18, %s1813_s7 }
 0x30e   : > { %p1447_p13 = scmp.lt.u32.totalorder %s1445_s8, %s1441_s11  ;;  %p1449_p1 = scmp.lt.u32.totalorder %s1441_s11, %s1764_s18 }
 0x30f   : > { %p1443_p10 = pnand %p1442_p7, %p1579_p6 }
 0x310   : > { %p1448_p0 = por %p1447_p13, %p1446_p12 }
 0x311   : > { %p1444_p11 = pneg %p1443_p10 }
 0x312   : > { %p1450_p2 = por %p1449_p1, %p1448_p0 }
 0x314   : > { %p1451_p3 = pnand %p1450_p2, %p1444_p11 }
 0x316   : > { %1454 = shalt.err (!%p1451_p3)
}
 0x317   : > { %1351 = dma.vmem_to_hbm [thread:$0]  (%p1579_p6), %s1759_s14, 64, %s1764_s18, %s1093_s19   ;;  %v1350_v20 = vpop.f32.mrb[23].mxu0 }
 0x318 PF: > { %s1118_s16 = sand.u32 1, %s1477_s24   ;;  %p1354_p4 = pnand %p1191_p9, %p1583_p8 }
 0x319   : > { %s1119_s17 = scalar_lea.sflag [#allocation5], %s1118_s16 }
 0x31a   : > { %1472 = dma.done.wait (!%p1354_p4), %s1119_s17, 64  }
 0x31b   : > { %1474 = vsyncadd (!%p1354_p4), %s1119_s17, 4294967232  ;;  %p17_p5 = scmp.ge.s32.totalorder %s1560_s30, 4   ;;  %s1817_s24 = smov %s1481_s25 }
 0x31c   : > { %s1818_s25 = smov %s1485_s26  ;;  %s1819_s26 = smov %s1573_s10 }
 0x31d   : > { %s1820_s27 = smov %s1560_s30  ;;  %19 = sbr.rel (!%p17_p5) target bundleno = 3 (0x3), region = 178 }
 0x324   :  { %1124 = vsyncpa [#allocation5], 1 }
 0x325   :  { %1126 = vsyncpa [#allocation5 + $0x1], 1 }

</bundles_post_ra>
